<compile_context>
chip_gen: v5e
topology: v5e:2x2
jax: 0.10.0
libtpu: 0.0.40
codegen_flags: <defaults>
</compile_context>

<pallas_src>
import jax
import jax.numpy as jnp
from jax.experimental import pallas as pl
from jax.experimental.pallas import tpu as pltpu


def _round_up(n: int, m: int) -> int:
    return ((n + m - 1) // m) * m


def linear_kernel(x_ref, w_ref, b_ref, o_ref):
    # x_ref: (IN, tb) VMEM, feature-major (batch on lanes)
    # w_ref: (IN,)  SMEM scalars; b_ref: (1,) SMEM scalar
    # o_ref: (1, tb) VMEM, lane-dense output block
    in_features = x_ref.shape[0]
    acc = x_ref[0:1, :] * w_ref[0] + b_ref[0]          # (1, tb) f32
    for f in range(1, in_features):                     # static unroll: 9 VPU scalar-broadcast FMAs
        acc = acc + x_ref[f:f + 1, :] * w_ref[f]
    o_ref[...] = acc.astype(o_ref.dtype)


def simple_model_forward(x, w, b, *, tb: int = 32768, core_parallel: bool = False):
    """Pallas equivalent of SimpleModel.forward (nn.Linear(10, 1)).

    x: (B, 10) f32
    w: (1, 10) f32  (PyTorch nn.Linear layout: (out_features, in_features))
    b: (1,)    f32
    returns (B, 1) f32
    """
    B, IN = x.shape
    OUT, IN_w = w.shape
    assert IN_w == IN and OUT == 1 and b.shape == (OUT,)

    # Feature-major view so batch lands on lanes (layout plumbing in the wrapper).
    # TODO(synk): highest-ceiling variant would keep x contiguous via a free
    # (B//128, 128*IN) reshape + segmented lane reduce, avoiding this transpose pass.
    x_fm = x.T                    # (IN, B)
    w_flat = w.reshape(IN)        # (IN,) -> SMEM scalars

    if B <= tb:
        tb = B                    # single block == full array: no alignment constraint
    else:
        tb = _round_up(tb, 128)   # lane-aligned blocks; ragged last block handled by Pallas
    grid = (pl.cdiv(B, tb),)

    batch_sem = pltpu.CORE_PARALLEL if core_parallel else pltpu.PARALLEL

    out = pl.pallas_call(
        linear_kernel,
        out_shape=jax.ShapeDtypeStruct((OUT, B), jnp.float32),
        grid_spec=pltpu.PrefetchScalarGridSpec(
            num_scalar_prefetch=0,
            grid=grid,
            in_specs=[
                # x: feature-major, batch-tiled on lanes, pipelined HBM->VMEM.
                pl.BlockSpec((IN, tb), lambda i: (0, i)),
                # w: 10 scalars in SMEM (no padded VMEM tile, cheap scalar reads).
                pl.BlockSpec(memory_space=pltpu.MemorySpace.SMEM),
                # bias: 1 scalar in SMEM.
                pl.BlockSpec(memory_space=pltpu.MemorySpace.SMEM),
            ],
            # Lane-dense output: (1, tb) per step -> full-width unmasked stores.
            out_specs=pl.BlockSpec((OUT, tb), lambda i: (0, i)),
        ),
        compiler_params=pltpu.CompilerParams(
            dimension_semantics=(batch_sem,),
        ),
        cost_estimate=pl.CostEstimate(
            flops=2 * B * IN,
            transcendentals=0,
            bytes_accessed=4 * (B * IN + IN + OUT + B * OUT),
        ),
    )(x_fm, w_flat, b)

    # (1, B) -> (B, 1): contiguous reshape, free.
    return out.reshape(B, OUT)


if __name__ == "__main__":
    key = jax.random.PRNGKey(0)
    k_x, k_w, k_b = jax.random.split(key, 3)

    B, IN, OUT = 8, 10, 1

    # Deterministic params mimicking nn.Linear default init:
    # uniform(-1/sqrt(in_features), 1/sqrt(in_features)), PyTorch layouts.
    bound = 1.0 / jnp.sqrt(jnp.float32(IN))
    w = jax.random.uniform(k_w, (OUT, IN), jnp.float32, -bound, bound)  # (1, 10)
    b = jax.random.uniform(k_b, (OUT,), jnp.float32, -bound, bound)     # (1,)

    x = jax.random.normal(k_x, (B, IN), jnp.float32)

    out = jax.block_until_ready(simple_model_forward(x, w, b))

    # Reference: plain JAX linear in PyTorch convention.
    ref = x @ w.T + b
    assert out.shape == (B, OUT)
    assert jnp.allclose(out, ref, atol=1e-5), "mismatch vs reference"

    print("KERNEL_OK")
</pallas_src>

<mosaic_0001>
module attributes {stable_mosaic.version = 11 : i64} {
  func.func @linear_kernel(%arg0: i32, %arg1: memref<10x8xf32, #tpu.memory_space<vmem>>, %arg2: memref<10xf32, #tpu.memory_space<smem>>, %arg3: memref<1xf32, #tpu.memory_space<smem>>, %arg4: memref<1x8xf32, #tpu.memory_space<vmem>>) attributes {dimension_semantics = [#tpu.dimension_semantics<parallel>], iteration_bounds = array<i64: 1>, scalar_prefetch = 0 : i64, scratch_operands = 0 : i64, tpu.core_type = #tpu.core_type<tc>, window_params = [{transform_indices = @transform_0, window_bounds = array<i64: 10, 8>}, {transform_indices = @transform_1, window_bounds = array<i64: 10>}, {transform_indices = @transform_2, window_bounds = array<i64: 1>}, {transform_indices = @transform_3, window_bounds = array<i64: 1, 8>}]} {
    %c0 = arith.constant 0 : index
    %c0_0 = arith.constant 0 : index
    %0 = vector.load %arg1[%c0, %c0_0] : memref<10x8xf32, #tpu.memory_space<vmem>>, vector<1x8xf32>
    %c0_1 = arith.constant 0 : index
    %1 = memref.load %arg2[%c0_1] : memref<10xf32, #tpu.memory_space<smem>>
    %2 = vector.broadcast %1 : f32 to vector<1x8xf32>
    %3 = arith.mulf %0, %2 : vector<1x8xf32>
    %c0_2 = arith.constant 0 : index
    %4 = memref.load %arg3[%c0_2] : memref<1xf32, #tpu.memory_space<smem>>
    %5 = vector.broadcast %4 : f32 to vector<1x8xf32>
    %6 = arith.addf %3, %5 : vector<1x8xf32>
    %c1 = arith.constant 1 : index
    %c0_3 = arith.constant 0 : index
    %7 = vector.load %arg1[%c1, %c0_3] : memref<10x8xf32, #tpu.memory_space<vmem>>, vector<1x8xf32>
    %c1_4 = arith.constant 1 : index
    %8 = memref.load %arg2[%c1_4] : memref<10xf32, #tpu.memory_space<smem>>
    %9 = vector.broadcast %8 : f32 to vector<1x8xf32>
    %10 = arith.mulf %7, %9 : vector<1x8xf32>
    %11 = arith.addf %6, %10 : vector<1x8xf32>
    %c2 = arith.constant 2 : index
    %c0_5 = arith.constant 0 : index
    %12 = vector.load %arg1[%c2, %c0_5] : memref<10x8xf32, #tpu.memory_space<vmem>>, vector<1x8xf32>
    %c2_6 = arith.constant 2 : index
    %13 = memref.load %arg2[%c2_6] : memref<10xf32, #tpu.memory_space<smem>>
    %14 = vector.broadcast %13 : f32 to vector<1x8xf32>
    %15 = arith.mulf %12, %14 : vector<1x8xf32>
    %16 = arith.addf %11, %15 : vector<1x8xf32>
    %c3 = arith.constant 3 : index
    %c0_7 = arith.constant 0 : index
    %17 = vector.load %arg1[%c3, %c0_7] : memref<10x8xf32, #tpu.memory_space<vmem>>, vector<1x8xf32>
    %c3_8 = arith.constant 3 : index
    %18 = memref.load %arg2[%c3_8] : memref<10xf32, #tpu.memory_space<smem>>
    %19 = vector.broadcast %18 : f32 to vector<1x8xf32>
    %20 = arith.mulf %17, %19 : vector<1x8xf32>
    %21 = arith.addf %16, %20 : vector<1x8xf32>
    %c4 = arith.constant 4 : index
    %c0_9 = arith.constant 0 : index
    %22 = vector.load %arg1[%c4, %c0_9] : memref<10x8xf32, #tpu.memory_space<vmem>>, vector<1x8xf32>
    %c4_10 = arith.constant 4 : index
    %23 = memref.load %arg2[%c4_10] : memref<10xf32, #tpu.memory_space<smem>>
    %24 = vector.broadcast %23 : f32 to vector<1x8xf32>
    %25 = arith.mulf %22, %24 : vector<1x8xf32>
    %26 = arith.addf %21, %25 : vector<1x8xf32>
    %c5 = arith.constant 5 : index
    %c0_11 = arith.constant 0 : index
    %27 = vector.load %arg1[%c5, %c0_11] : memref<10x8xf32, #tpu.memory_space<vmem>>, vector<1x8xf32>
    %c5_12 = arith.constant 5 : index
    %28 = memref.load %arg2[%c5_12] : memref<10xf32, #tpu.memory_space<smem>>
    %29 = vector.broadcast %28 : f32 to vector<1x8xf32>
    %30 = arith.mulf %27, %29 : vector<1x8xf32>
    %31 = arith.addf %26, %30 : vector<1x8xf32>
    %c6 = arith.constant 6 : index
    %c0_13 = arith.constant 0 : index
    %32 = vector.load %arg1[%c6, %c0_13] : memref<10x8xf32, #tpu.memory_space<vmem>>, vector<1x8xf32>
    %c6_14 = arith.constant 6 : index
    %33 = memref.load %arg2[%c6_14] : memref<10xf32, #tpu.memory_space<smem>>
    %34 = vector.broadcast %33 : f32 to vector<1x8xf32>
    %35 = arith.mulf %32, %34 : vector<1x8xf32>
    %36 = arith.addf %31, %35 : vector<1x8xf32>
    %c7 = arith.constant 7 : index
    %c0_15 = arith.constant 0 : index
    %37 = vector.load %arg1[%c7, %c0_15] : memref<10x8xf32, #tpu.memory_space<vmem>>, vector<1x8xf32>
    %c7_16 = arith.constant 7 : index
    %38 = memref.load %arg2[%c7_16] : memref<10xf32, #tpu.memory_space<smem>>
    %39 = vector.broadcast %38 : f32 to vector<1x8xf32>
    %40 = arith.mulf %37, %39 : vector<1x8xf32>
    %41 = arith.addf %36, %40 : vector<1x8xf32>
    %c8 = arith.constant 8 : index
    %c0_17 = arith.constant 0 : index
    %42 = vector.load %arg1[%c8, %c0_17] : memref<10x8xf32, #tpu.memory_space<vmem>>, vector<1x8xf32>
    %c8_18 = arith.constant 8 : index
    %43 = memref.load %arg2[%c8_18] : memref<10xf32, #tpu.memory_space<smem>>
    %44 = vector.broadcast %43 : f32 to vector<1x8xf32>
    %45 = arith.mulf %42, %44 : vector<1x8xf32>
    %46 = arith.addf %41, %45 : vector<1x8xf32>
    %c9 = arith.constant 9 : index
    %c0_19 = arith.constant 0 : index
    %47 = vector.load %arg1[%c9, %c0_19] : memref<10x8xf32, #tpu.memory_space<vmem>>, vector<1x8xf32>
    %c9_20 = arith.constant 9 : index
    %48 = memref.load %arg2[%c9_20] : memref<10xf32, #tpu.memory_space<smem>>
    %49 = vector.broadcast %48 : f32 to vector<1x8xf32>
    %50 = arith.mulf %47, %49 : vector<1x8xf32>
    %51 = arith.addf %46, %50 : vector<1x8xf32>
    %c0_21 = arith.constant 0 : index
    %c0_22 = arith.constant 0 : index
    %52 = vector.load %arg4[%c0_21, %c0_22] : memref<1x8xf32, #tpu.memory_space<vmem>>, vector<1x8xf32>
    tpu.vector_store %arg4[%c0_21, %c0_22], %51 {strides = array<i32>} : memref<1x8xf32, #tpu.memory_space<vmem>>, vector<1x8xf32>,
    return
  }
  func.func @transform_0(%arg0: i32) -> (i32, i32) {
    %c0_i32 = arith.constant 0 : i32
    %c0_i32_0 = arith.constant 0 : i32
    return %c0_i32, %arg0 : i32, i32
  }
  func.func @transform_1(%arg0: i32) -> i32 {
    %c0_i32 = arith.constant 0 : i32
    %c0_i32_0 = arith.constant 0 : i32
    return %c0_i32 : i32
  }
  func.func @transform_2(%arg0: i32) -> i32 {
    %c0_i32 = arith.constant 0 : i32
    %c0_i32_0 = arith.constant 0 : i32
    return %c0_i32 : i32
  }
  func.func @transform_3(%arg0: i32) -> (i32, i32) {
    %c0_i32 = arith.constant 0 : i32
    %c0_i32_0 = arith.constant 0 : i32
    return %c0_i32, %arg0 : i32, i32
  }
}

</mosaic_0001>

<bundles_post_ra>
// kernel: tpu_custom_call.1
= control target key start
LH: loop header
LB: loop body
LE: loop exit
PB: predicated region body
PF: predicated region fallthrough
CT: control target
= control target key end

     0   :  { %9 = vsyncpa [#allocation5], 0  ;;  %s212_s0 = inlined_call_operand.vmem [shape: f32[10,8], index: 0, kind: input, shape index: {}]   ;;  %s213_s1 = inlined_call_operand.vmem [shape: f32[10], index: 1, kind: input, shape index: {}]   ;;  %s214_s2 = inlined_call_operand.<no memory space> [shape: f32[1], index: 2, kind: input, shape index: {}]   ;;  %s215_s3 = inlined_call_operand.hbm [shape: f32[1,8], index: 3, kind: output, shape index: {}]  }
   0x1   :  { %10 = vsyncpa [#allocation4], 0  ;;  %s18_s14 = sshll.u32 %s213_s1, 4  ;;  %s151_s15 = smov [#allocation3]   ;;  %s19_s14 = int_to_ptr.vmem [resolvable:$true] %s18_s14 }
   0x2   :  { %21 = dma.vmem_to_smem %s19_s14, 16, %s151_s15, [#allocation5]  }
   0x3   :  { %147 = dma.done.wait [#allocation5], 16  }
   0x4   :  { %148 = vsyncadd [#allocation5], 4294967280 }
   0x5   :  { %28 = sfence }
   0x6   :  { %s30_s16 = sld [smem:[#allocation3]]  ;;  %v29_v0 = vld [vmem:[%s212_s0] sm:$0x1]  ;;  %v36_v1 = vld [vmem:[%s212_s0 + $0x1] sm:$0x1]  ;;  %v34_v3 = vstv %s214_s2  ;;  %s90_s23 = sshll.u32 %s215_s3, 4  ;;  %s91_s23 = int_to_ptr.hbm [resolvable:$true] %s90_s23 }
   0x7   :  { %s100_s17 = sld [smem:[#allocation3 + $0x1]]  ;;  %v41_v4 = vld [vmem:[%s212_s0 + $0x2] sm:$0x1]  ;;  %v46_v9 = vld [vmem:[%s212_s0 + $0x3] sm:$0x1]  ;;  %vm81_vm0 = vcmask 57344  }
   0x8   :  { %s101_s18 = sld [smem:[#allocation3 + $0x2]]  ;;  %v51_v13 = vld [vmem:[%s212_s0 + $0x4] sm:$0x1]  ;;  %v56_v17 = vld [vmem:[%s212_s0 + $0x5] sm:$0x1] }
   0x9   :  { %s102_s19 = sld [smem:[#allocation3 + $0x3]]  ;;  %v61_v21 = vld [vmem:[%s212_s0 + $0x6] sm:$0x1]  ;;  %v66_v25 = vld [vmem:[%s212_s0 + $0x7] sm:$0x1] }
   0xa   :  { %s103_s22 = sld [smem:[#allocation3 + $0x4]]  ;;  %v71_v29 = vld [vmem:[%s212_s0 + $0x8] sm:$0x1]  ;;  %v76_v33 = vld [vmem:[%s212_s0 + $0x9] sm:$0x1] }
   0xb   :  { %s104_s1 = sld [smem:[#allocation3 + $0x5]] }
   0xc   :  { %v31_v2 = vstv %s30_s16  ;;  %s105_s29 = sld [smem:[#allocation3 + $0x6]] }
   0xd   :  { %v32_v5 = vmul.f32 %v31_v2, %v29_v0  ;;  %v38_v6 = vstv %s100_s17  ;;  %s106_s5 = sld [smem:[#allocation3 + $0x7]] }
   0xe   :  { %v39_v7 = vmul.f32 %v38_v6, %v36_v1  ;;  %v43_v8 = vstv %s101_s18  ;;  %s107_s2 = sld [smem:[#allocation3 + $0x8]] }
   0xf   :  { %v35_v10 = vadd.f32 %v34_v3, %v32_v5  ;;  %v44_v11 = vmul.f32 %v43_v8, %v41_v4  ;;  %v48_v12 = vstv %s102_s19  ;;  %s108_s10 = sld [smem:[#allocation3 + $0x9]]  ;;  %s152_s19 = smov [#allocation6]  }
  0x10   :  { %v53_v14 = vstv %s103_s22  ;;  %v49_v16 = vmul.f32 %v48_v12, %v46_v9  ;;  %s88_s20 = sshll.u32 %s152_s19, 4  ;;  %s89_s20 = int_to_ptr.vmem [resolvable:$true] %s88_s20 }
  0x11   :  { %v40_v15 = vadd.f32 %v39_v7, %v35_v10  ;;  %v58_v18 = vstv %s104_s1  ;;  %v54_v20 = vmul.f32 %v53_v14, %v51_v13 }
  0x12   :  { %v63_v22 = vstv %s105_s29  ;;  %v59_v24 = vmul.f32 %v58_v18, %v56_v17 }
  0x13   :  { %v45_v19 = vadd.f32 %v44_v11, %v40_v15  ;;  %v68_v26 = vstv %s106_s5  ;;  %v64_v28 = vmul.f32 %v63_v22, %v61_v21 }
  0x14   :  { %v73_v30 = vstv %s107_s2  ;;  %v69_v32 = vmul.f32 %v68_v26, %v66_v25 }
  0x15   :  { %v50_v23 = vadd.f32 %v49_v16, %v45_v19  ;;  %v78_v34 = vstv %s108_s10  ;;  %v74_v36 = vmul.f32 %v73_v30, %v71_v29 }
  0x16   :  { %v79_v38 = vmul.f32 %v78_v34, %v76_v33 }
  0x17   :  { %v55_v27 = vadd.f32 %v54_v20, %v50_v23 }
  0x19   :  { %v60_v31 = vadd.f32 %v59_v24, %v55_v27 }
  0x1b   :  { %v65_v35 = vadd.f32 %v64_v28, %v60_v31 }
  0x1d   :  { %v70_v37 = vadd.f32 %v69_v32, %v65_v35 }
  0x1f   :  { %v75_v39 = vadd.f32 %v74_v36, %v70_v37 }
  0x21   :  { %v80_v40 = vadd.f32 %v79_v38, %v75_v39 }
  0x23   :  { %82 = vst.msk [vmem:[#allocation6] sm:$0x1] %vm81_vm0, %v80_v40 }
  0x24   :  { %93 = dma.vmem_to_hbm [thread:$0]  %s89_s20, 16, %s91_s23, [#allocation4]  }
  0x25   :  { %149 = dma.done.wait [#allocation4], 16  }
  0x26   :  { %150 = vsyncadd [#allocation4], 4294967280 }
  0x27   :  { %98 = vsyncpa [#allocation4], 1 }
  0x28   :  { %99 = vsyncpa [#allocation5], 1 }

</bundles_post_ra>
